<compile_context>
chip_gen: v6e
topology: v6e:2x2x1
jax: 0.10.0
libtpu: 0.0.40
codegen_flags: <defaults>
</compile_context>

<pallas_src>
import functools
import math

import jax
import jax.numpy as jnp
from jax import lax
from jax.experimental import pallas as pl
from jax.experimental.pallas import tpu as pltpu


def _final_norm_kernel(x_ref, gamma_ref, beta_ref, o_ref, *, eps: float, inv_h: float):
    # x_ref: (t, n_hidden) tile of rows; normalize each row over the last dim.
    x = x_ref[...].astype(jnp.float32)

    # One pass over the tile for both reduction moments (XLU reduces).
    s1 = jnp.sum(x, axis=-1, keepdims=True)           # (t, 1)
    s2 = jnp.sum(x * x, axis=-1, keepdims=True)       # (t, 1)
    mean = s1 * inv_h
    var = s2 * inv_h - mean * mean                    # biased variance (matches torch LN)

    inv = lax.rsqrt(var + eps)                        # EUP rsqrt — free next to DMA
    gamma = gamma_ref[...].astype(jnp.float32)        # (1, n_hidden)
    beta = beta_ref[...].astype(jnp.float32)          # (1, n_hidden)

    scale = inv * gamma                               # fold inv*gamma once -> (t, n_hidden)
    o_ref[...] = ((x - mean) * scale + beta).astype(o_ref.dtype)


def final_norm_forward(
    x: jax.Array,
    weight: jax.Array,
    bias: jax.Array,
    *,
    eps: float = 1e-5,
    block_rows: int = 2048,
) -> jax.Array:
    """LayerNorm over the last dim of x.

    x:      [batch, seq, n_hidden]
    weight: [n_hidden]   (gamma)
    bias:   [n_hidden]   (beta)
    returns [batch, seq, n_hidden], same dtype as x.
    """
    batch, seq, n_hidden = x.shape
    rows = batch * seq
    in_bytes = x.dtype.itemsize
    out_bytes = x.dtype.itemsize

    # ---- Row-tile selection ------------------------------------------------
    # (a) aim for ~3 MiB per x tile (measured: 2-4 MiB tiles hit ~85% of HBM
    #     roofline vs ~29% for 128-row-class tiles),
    # (b) cap by a pipeline-VMEM budget of ~36 MiB so the kernel also fits
    #     v7x's 64 MiB VMEM: 2x double-buffered in + 2x out + ~3 f32 temps,
    # (c) never exceed the caller's block_rows upper bound or (rounded) rows.
    target_tile_bytes = 3 << 20
    vmem_budget_bytes = 36 << 20
    per_row_pipeline_bytes = n_hidden * (2 * in_bytes + 2 * out_bytes + 3 * 4)

    t = target_tile_bytes // (n_hidden * in_bytes)
    t = min(t, vmem_budget_bytes // per_row_pipeline_bytes)
    t = min(t, block_rows, ((rows + 7) // 8) * 8)
    t = max(8, (t // 8) * 8)  # sublane-dense

    x2 = x.reshape(rows, n_hidden)
    gamma2 = weight.reshape(1, n_hidden)
    beta2 = bias.reshape(1, n_hidden)

    # No padding: Pallas handles the ragged boundary block (rows are
    # independent; garbage boundary-row results are dropped on writeback).
    grid = (pl.cdiv(rows, t),)

    grid_spec = pltpu.PrefetchScalarGridSpec(
        num_scalar_prefetch=0,
        grid=grid,
        in_specs=[
            pl.BlockSpec((t, n_hidden), lambda i: (i, 0)),   # x tile
            pl.BlockSpec((1, n_hidden), lambda i: (0, 0)),   # gamma (resident)
            pl.BlockSpec((1, n_hidden), lambda i: (0, 0)),   # beta  (resident)
        ],
        out_specs=pl.BlockSpec((t, n_hidden), lambda i: (i, 0)),
    )

    kernel = functools.partial(_final_norm_kernel, eps=eps, inv_h=1.0 / n_hidden)

    cost = pl.CostEstimate(
        flops=8 * rows * n_hidden,
        transcendentals=rows,
        bytes_accessed=rows * n_hidden * (in_bytes + out_bytes)
        + 2 * n_hidden * weight.dtype.itemsize,
    )

    out_flat = pl.pallas_call(
        kernel,
        out_shape=jax.ShapeDtypeStruct((rows, n_hidden), x.dtype),
        grid_spec=grid_spec,
        compiler_params=pltpu.CompilerParams(
            # Rows are independent.
            dimension_semantics=("parallel",),
            # Lift v5e (16 MiB) / v6e (32 MiB) scoped defaults; 48 MiB leaves
            # ~25% headroom under v7x's 64 MiB physical VMEM.
            vmem_limit_bytes=48 << 20,
        ),
        cost_estimate=cost,
    )(x2, gamma2, beta2)

    return out_flat.reshape(batch, seq, n_hidden)


if __name__ == "__main__":
    # Small shapes consistent with FinalNorm.forward: x is [batch, seq, n_hidden].
    batch, seq, n_hidden = 2, 8, 256  # n_hidden kept a multiple of 128 (lane width)
    eps = 1e-5

    key = jax.random.PRNGKey(0)
    k_x, k_w, k_b = jax.random.split(key, 3)

    x = jax.random.normal(k_x, (batch, seq, n_hidden), dtype=jnp.float32)
    # nn.LayerNorm defaults are ones/zeros; random affine params for a stronger test.
    weight = 1.0 + 0.1 * jax.random.normal(k_w, (n_hidden,), dtype=jnp.float32)
    bias = 0.1 * jax.random.normal(k_b, (n_hidden,), dtype=jnp.float32)

    out = final_norm_forward(x, weight, bias, eps=eps)
    out = jax.block_until_ready(out)

    # Reference LayerNorm (biased variance, same as torch.nn.LayerNorm).
    mean = jnp.mean(x, axis=-1, keepdims=True)
    var = jnp.mean((x - mean) ** 2, axis=-1, keepdims=True)
    ref = (x - mean) / jnp.sqrt(var + eps) * weight + bias

    assert out.shape == (batch, seq, n_hidden)
    assert out.dtype == x.dtype
    assert jnp.allclose(out, ref, atol=1e-4, rtol=1e-5), "Pallas FinalNorm mismatch vs reference"

    print("KERNEL_OK")
</pallas_src>

<mosaic_0001>
module attributes {stable_mosaic.version = 11 : i64} {
  func.func @_final_norm_kernel(%arg0: i32, %arg1: memref<16x256xf32, #tpu.memory_space<vmem>>, %arg2: memref<1x256xf32, #tpu.memory_space<vmem>>, %arg3: memref<1x256xf32, #tpu.memory_space<vmem>>, %arg4: memref<16x256xf32, #tpu.memory_space<vmem>>) attributes {dimension_semantics = [#tpu.dimension_semantics<parallel>], iteration_bounds = array<i64: 1>, scalar_prefetch = 0 : i64, scratch_operands = 0 : i64, tpu.core_type = #tpu.core_type<tc>, window_params = [{transform_indices = @transform_0, window_bounds = array<i64: 16, 256>}, {pipeline_mode = #tpu.pipeline_mode<synchronous>, transform_indices = @transform_1, window_bounds = array<i64: 1, 256>}, {pipeline_mode = #tpu.pipeline_mode<synchronous>, transform_indices = @transform_2, window_bounds = array<i64: 1, 256>}, {transform_indices = @transform_3, window_bounds = array<i64: 16, 256>}]} {
    %c0 = arith.constant 0 : index
    %c0_0 = arith.constant 0 : index
    %0 = vector.load %arg1[%c0, %c0_0] : memref<16x256xf32, #tpu.memory_space<vmem>>, vector<16x256xf32>
    %cst = arith.constant dense<0.000000e+00> : vector<16xf32>
    %1 = vector.multi_reduction <add>, %0, %cst [1] : vector<16x256xf32> to vector<16xf32>
    %2 = vector.shape_cast %1 : vector<16xf32> to vector<16x1xf32>
    %3 = arith.mulf %0, %0 : vector<16x256xf32>
    %cst_1 = arith.constant dense<0.000000e+00> : vector<16xf32>
    %4 = vector.multi_reduction <add>, %3, %cst_1 [1] : vector<16x256xf32> to vector<16xf32>
    %5 = vector.shape_cast %4 : vector<16xf32> to vector<16x1xf32>
    %cst_2 = arith.constant 3.906250e-03 : f32
    %6 = vector.broadcast %cst_2 : f32 to vector<16x1xf32>
    %7 = arith.mulf %2, %6 : vector<16x1xf32>
    %cst_3 = arith.constant 3.906250e-03 : f32
    %8 = vector.broadcast %cst_3 : f32 to vector<16x1xf32>
    %9 = arith.mulf %5, %8 : vector<16x1xf32>
    %10 = arith.mulf %7, %7 : vector<16x1xf32>
    %11 = arith.subf %9, %10 : vector<16x1xf32>
    %cst_4 = arith.constant 9.99999974E-6 : f32
    %12 = vector.broadcast %cst_4 : f32 to vector<16x1xf32>
    %13 = arith.addf %11, %12 : vector<16x1xf32>
    %14 = math.rsqrt %13 : vector<16x1xf32>
    %c0_5 = arith.constant 0 : index
    %c0_6 = arith.constant 0 : index
    %15 = vector.load %arg2[%c0_5, %c0_6] : memref<1x256xf32, #tpu.memory_space<vmem>>, vector<1x256xf32>
    %c0_7 = arith.constant 0 : index
    %c0_8 = arith.constant 0 : index
    %16 = vector.load %arg3[%c0_7, %c0_8] : memref<1x256xf32, #tpu.memory_space<vmem>>, vector<1x256xf32>
    %17 = vector.broadcast %14 : vector<16x1xf32> to vector<16x256xf32>
    %18 = vector.broadcast %15 : vector<1x256xf32> to vector<16x256xf32>
    %19 = arith.mulf %17, %18 : vector<16x256xf32>
    %20 = vector.broadcast %7 : vector<16x1xf32> to vector<16x256xf32>
    %21 = arith.subf %0, %20 : vector<16x256xf32>
    %22 = arith.mulf %21, %19 : vector<16x256xf32>
    %23 = vector.broadcast %16 : vector<1x256xf32> to vector<16x256xf32>
    %24 = arith.addf %22, %23 : vector<16x256xf32>
    %c0_9 = arith.constant 0 : index
    %c0_10 = arith.constant 0 : index
    %25 = vector.load %arg4[%c0_9, %c0_10] : memref<16x256xf32, #tpu.memory_space<vmem>>, vector<16x256xf32>
    tpu.vector_store %arg4[%c0_9, %c0_10], %24 {strides = array<i32>} : memref<16x256xf32, #tpu.memory_space<vmem>>, vector<16x256xf32>,
    return
  }
  func.func @transform_0(%arg0: i32) -> (i32, i32) {
    %c0_i32 = arith.constant 0 : i32
    %c0_i32_0 = arith.constant 0 : i32
    return %arg0, %c0_i32 : i32, i32
  }
  func.func @transform_1(%arg0: i32) -> (i32, i32) {
    %c0_i32 = arith.constant 0 : i32
    %c0_i32_0 = arith.constant 0 : i32
    %c0_i32_1 = arith.constant 0 : i32
    return %c0_i32, %c0_i32_0 : i32, i32
  }
  func.func @transform_2(%arg0: i32) -> (i32, i32) {
    %c0_i32 = arith.constant 0 : i32
    %c0_i32_0 = arith.constant 0 : i32
    %c0_i32_1 = arith.constant 0 : i32
    return %c0_i32, %c0_i32_0 : i32, i32
  }
  func.func @transform_3(%arg0: i32) -> (i32, i32) {
    %c0_i32 = arith.constant 0 : i32
    %c0_i32_0 = arith.constant 0 : i32
    return %arg0, %c0_i32 : i32, i32
  }
}

</mosaic_0001>

<bundles_post_ra>
// kernel: tpu_custom_call.1
= control target key start
LH: loop header
LB: loop body
LE: loop exit
PB: predicated region body
PF: predicated region fallthrough
CT: control target
= control target key end

     0   :  { %8 = vsyncpa [#allocation3], 0  ;;  %s253_s0 = inlined_call_operand.hbm [shape: f32[16,256], index: 0, kind: input, shape index: {}]   ;;  %s254_s1 = inlined_call_operand.hbm [shape: f32[1,256], index: 1, kind: input, shape index: {}]   ;;  %s255_s2 = inlined_call_operand.vmem [shape: f32[1,256], index: 2, kind: input, shape index: {}]   ;;  %s256_s3 = inlined_call_operand.hbm [shape: f32[16,256], index: 3, kind: output, shape index: {}]  }
   0x1   :  { %9 = vsyncpa [#allocation6], 0 }
   0x2   :  { %10 = vsyncpa [#allocation4], 0  ;;  %s210_s12 = smov [#allocation2]  }
   0x3   :  { %s16_s13 = sshll.u32 %s210_s12, 4  ;;  %s17_s13 = int_to_ptr.vmem [resolvable:$true] %s16_s13 }
   0x4   :  { %s152_s14 = scalar_lea.vmem %s17_s13, 512  ;;  %p157_p1 = scmp.lt.s32.totalorder %s17_s13, %s17_s13 }
   0x5   :  { %p153_p0 = scmp.ne.s32.totalorder %s17_s13, %s152_s14  ;;  %p158_p2 = scmp.lt.s32.totalorder %s152_s14, %s152_s14 }
   0x7   :  { %p159_p3 = por %p158_p2, %p157_p1 }
   0x9   :  { %p160_p4 = pnand %p159_p3, %p153_p0 }
   0xb   :  { %163 = shalt.err (!%p160_p4)
}
   0xc   :  { %s211_s15 = smov 256   ;;  %s212_s16 = smov 16  }
   0xd   :  { %22 = dma.hbm_to_vmem [thread:$0]  %s253_s0, 512, %s17_s13, [#allocation3], %s211_s15, %s211_s15, %s212_s16  }
   0xe   :  { %s213_s19 = smov [#allocation5]  }
   0xf   :  { %s29_s20 = sshll.u32 %s213_s19, 4  ;;  %s30_s20 = int_to_ptr.vmem [resolvable:$true] %s29_s20 }
  0x10   :  { %s172_s21 = scalar_lea.vmem %s30_s20, 32  ;;  %p177_p6 = scmp.lt.s32.totalorder %s30_s20, %s30_s20 }
  0x11   :  { %p173_p5 = scmp.ne.s32.totalorder %s30_s20, %s172_s21  ;;  %p178_p7 = scmp.lt.s32.totalorder %s172_s21, %s172_s21 }
  0x13   :  { %p179_p8 = por %p178_p7, %p177_p6 }
  0x15   :  { %p180_p9 = pnand %p179_p8, %p173_p5 }
  0x17   :  { %183 = shalt.err (!%p180_p9)
}
  0x18   :  { %32 = dma.hbm_to_vmem [thread:$0]  %s254_s1, 32, %s30_s20, [#allocation6]  }
  0x19   :  { %204 = dma.done.wait [#allocation3], 512  }
  0x1a   :  { %205 = vsyncadd [#allocation3], 4294966784 }
  0x1b   :  { %206 = dma.done.wait [#allocation6], 32  }
  0x1c   :  { %207 = vsyncadd [#allocation6], 4294967264  ;;  %v41_v0 = vld [vmem:[#allocation2] sm:$0xff]  ;;  %v42_v1 = vld [vmem:[#allocation2 + $0x8] sm:$0xff]  ;;  %v76_v23 = vlaneseq }
  0x1d   :  { %v43_v2 = vld [vmem:[#allocation2 + $0x10] sm:$0xff]  ;;  %v45_v3 = vadd.f32 %v42_v1, %v41_v0  ;;  %v51_v4 = vmul.f32 %v41_v0, %v41_v0  ;;  %v52_v5 = vmul.f32 %v42_v1, %v42_v1  ;;  %v44_v6 = vld [vmem:[#allocation2 + $0x18] sm:$0xff]  ;;  %v73_v30 = vld [vmem:[#allocation5] sm:$0x3] }
  0x1e   :  { %v53_v7 = vmul.f32 %v43_v2, %v43_v2  ;;  %v54_v8 = vmul.f32 %v44_v6, %v44_v6  ;;  %v48_v10 = vadd.f32 %v44_v6, %v43_v2  ;;  %v77_v26 = vshrl.u32 %v76_v23, 7  ;;  %v74_v31 = vld [vmem:[%s255_s2] sm:$0x3]  ;;  %s214_s2 = smov [#allocation7]  }
  0x1f   :  { %46 = vadd.xlane.f32.xlu0 %v45_v3  ;;  %v55_v9 = vadd.f32 %v52_v5, %v51_v4  ;;  %s122_s24 = sshll.u32 %s214_s2, 4  ;;  %s123_s24 = int_to_ptr.vmem [resolvable:$true] %s122_s24 }
  0x20   :  { %v58_v11 = vadd.f32 %v54_v8, %v53_v7  ;;  %v78_v28 = vsub.s32 0, %v77_v26  ;;  %v82_v29 = vsub.s32 1, %v77_v26  ;;  %s184_s25 = scalar_lea.vmem %s123_s24, 512  ;;  %p189_p11 = scmp.lt.s32.totalorder %s123_s24, %s123_s24 }
  0x21   :  { %56 = vadd.xlane.f32.xlu1 %v55_v9  ;;  %p185_p10 = scmp.ne.s32.totalorder %s123_s24, %s184_s25  ;;  %p190_p12 = scmp.lt.s32.totalorder %s184_s25, %s184_s25 }
  0x22   :  { %v79_v32 = vrot.slane %v73_v30, %v78_v28  ;;  %v83_v33 = vrot.slane %v73_v30, %v82_v29  ;;  %v102_v35 = vrot.slane %v74_v31, %v78_v28  ;;  %v106_v36 = vrot.slane %v74_v31, %v82_v29 }
  0x23   :  { %49 = vadd.xlane.f32.xlu0 %v48_v10  ;;  %p191_p13 = por %p190_p12, %p189_p11 }
  0x25   :  { %59 = vadd.xlane.f32.xlu1 %v58_v11  ;;  %p192_p0 = pnand %p191_p13, %p185_p10 }
  0xa8   :  { %v47_v12 = vpop.xlane.xlu0 %46 }
  0xa9   :  { %v61_v13 = vmul.f32 0.00390625, %v47_v12 }
  0xaa   :  { %v57_v14 = vpop.xlane.xlu1 %56 }
  0xab   :  { %v63_v15 = vmul.f32 0.00390625, %v57_v14  ;;  %v65_v16 = vmul.f32 %v61_v13, %v61_v13  ;;  %v90_v37 = vsub.f32 %v41_v0, %v61_v13  ;;  %v91_v38 = vsub.f32 %v42_v1, %v61_v13 }
  0xac   :  { %v50_v17 = vpop.xlane.xlu0 %49 }
  0xad   :  { %v67_v18 = vsub.f32 %v63_v15, %v65_v16  ;;  %v62_v19 = vmul.f32 0.00390625, %v50_v17 }
  0xae   :  { %v60_v20 = vpop.xlane.xlu1 %59 }
  0xaf   :  { %v69_v21 = vadd.f32 1e-05, %v67_v18  ;;  %v64_v22 = vmul.f32 0.00390625, %v60_v20  ;;  %v66_v24 = vmul.f32 %v62_v19, %v62_v19  ;;  %v92_v46 = vsub.f32 %v43_v2, %v62_v19 }
  0xb0   :  { %v93_v47 = vsub.f32 %v44_v6, %v62_v19 }
  0xb1   :  { %140 = vrsqrt.f32 %v69_v21  ;;  %v68_v25 = vsub.f32 %v64_v22, %v66_v24 }
  0xb3   :  { %v70_v27 = vadd.f32 1e-05, %v68_v25 }
  0xb5   :  { %142 = vrsqrt.f32 %v70_v27 }
  0xbe   :  { %v141_v34 = vpop.eup %140 }
  0xbf   :  { %v86_v39 = vmul.f32 %v141_v34, %v79_v32  ;;  %v87_v40 = vmul.f32 %v141_v34, %v83_v33 }
  0xc1   :  { %v94_v41 = vmul.f32 %v90_v37, %v86_v39  ;;  %v95_v42 = vmul.f32 %v91_v38, %v87_v40 }
  0xc2   :  { %v143_v43 = vpop.eup %142 }
  0xc3   :  { %v109_v44 = vadd.f32 %v102_v35, %v94_v41  ;;  %v110_v45 = vadd.f32 %v106_v36, %v95_v42  ;;  %v88_v48 = vmul.f32 %v143_v43, %v79_v32  ;;  %v89_v49 = vmul.f32 %v143_v43, %v83_v33 }
  0xc5   :  { %113 = vst [vmem:[#allocation7] sm:$0xff] %v109_v44  ;;  %114 = vst [vmem:[#allocation7 + $0x8] sm:$0xff] %v110_v45  ;;  %v96_v50 = vmul.f32 %v92_v46, %v88_v48  ;;  %v97_v51 = vmul.f32 %v93_v47, %v89_v49 }
  0xc7   :  { %v111_v52 = vadd.f32 %v102_v35, %v96_v50  ;;  %v112_v53 = vadd.f32 %v106_v36, %v97_v51 }
  0xc9   :  { %115 = vst [vmem:[#allocation7 + $0x10] sm:$0xff] %v111_v52  ;;  %116 = vst [vmem:[#allocation7 + $0x18] sm:$0xff] %v112_v53 }
  0xca   :  { %195 = shalt.err (!%p192_p0)
}
  0xcb   :  { %128 = dma.vmem_to_hbm [thread:$0]  %s123_s24, 512, %s256_s3, [#allocation4], %s211_s15, %s211_s15, %s212_s16  }
  0xcc   :  { %208 = dma.done.wait [#allocation4], 512  }
  0xcd   :  { %209 = vsyncadd [#allocation4], 4294966784 }
  0xce   :  { %132 = vsyncpa [#allocation3], 1 }
  0xcf   :  { %133 = vsyncpa [#allocation6], 1 }
  0xd0   :  { %134 = vsyncpa [#allocation4], 1 }

</bundles_post_ra>
